<compile_context>
chip_gen: v5e
topology: v5e:2x2
jax: 0.10.0
libtpu: 0.0.40
codegen_flags: <defaults>
</compile_context>

<pallas_src>
import functools
import math

import jax
import jax.numpy as jnp
from jax.experimental import pallas as pl
from jax.experimental.pallas import tpu as pltpu


# -----------------------------------------------------------------------------
# Small helpers
# -----------------------------------------------------------------------------
def _approx_recip(x):
    # EUP approximate reciprocal (free slot); fall back to exact division if the
    # running JAX version lacks pl.reciprocal.
    if hasattr(pl, "reciprocal"):
        return pl.reciprocal(x, approx=True)
    return 1.0 / x


def _pick_row_tile(m):
    # Row (sublane) tile: biggest of these that divides m, else the full extent.
    for t in (256, 128, 64, 32, 16, 8):
        if t <= m and m % t == 0:
            return t
    return m


def _pick_lane_tile(n):
    # Lane tile: multiple of 128 that divides n, else the full extent.
    for t in (512, 256, 128):
        if t <= n and n % t == 0:
            return t
    return n


def _ln_f32(x, a, b, eps):
    # Annotated-Transformer LayerNorm: a*(x-mean)/(std+eps)+b, unbiased std (n-1).
    d = x.shape[-1]
    mean = jnp.mean(x, axis=-1, keepdims=True)
    diff = x - mean
    var = jnp.sum(diff * diff, axis=-1, keepdims=True) * (1.0 / (d - 1))
    inv = _approx_recip(jnp.sqrt(var) + eps)
    return a * diff * inv + b


# -----------------------------------------------------------------------------
# Pallas kernels
# -----------------------------------------------------------------------------
def _ln_linear_kernel(x_ref, *rest, eps, apply_ln):
    # o = LN(x) @ w + bias     (apply_ln=True)
    # o = x @ w + bias         (apply_ln=False)
    if apply_ln:
        a_ref, b_ref, w_ref, bias_ref, o_ref = rest
    else:
        w_ref, bias_ref, o_ref = rest
    x = x_ref[...].astype(jnp.float32)
    if apply_ln:
        x = _ln_f32(x, a_ref[...], b_ref[...], eps)
    acc = jnp.dot(x, w_ref[...].astype(jnp.float32),
                  preferred_element_type=jnp.float32)
    acc = acc + bias_ref[...]
    o_ref[...] = acc.astype(o_ref.dtype)


def _attn_kernel(*refs, n_heads, scale, self_attn):
    # One batch:  out = residual + softmax(q k^T * scale + bias) v @ wo + bo
    # Heads are static lane slices; the per-head output projection is folded
    # into the head loop (ctx_h @ wo[h*dk:(h+1)*dk, :]) so the stored slab is
    # always lane-dense (Sq, D).
    if self_attn:
        qkv_ref, bias_ref, wo_ref, bo_ref, res_ref, o_ref = refs
        qkv = qkv_ref[...].astype(jnp.float32)                  # (Sq, 3D)
        d = qkv.shape[-1] // 3
        q, k, v = qkv[:, :d], qkv[:, d:2 * d], qkv[:, 2 * d:]
    else:
        q_ref, kv_ref, bias_ref, wo_ref, bo_ref, res_ref, o_ref = refs
        q = q_ref[...].astype(jnp.float32)                      # (Sq, D)
        kv = kv_ref[...].astype(jnp.float32)                    # (Sk, 2D)
        d = q.shape[-1]
        k, v = kv[:, :d], kv[:, d:]

    attn_bias = bias_ref[...].astype(jnp.float32)               # (Sq|1, Sk)
    wo = wo_ref[...].astype(jnp.float32)                        # (D, D)
    dk = d // n_heads
    dn = (((1,), (1,)), ((), ()))                               # q·k^T contraction

    out = jnp.broadcast_to(bo_ref[...].astype(jnp.float32), (q.shape[0], d))
    for h in range(n_heads):
        lo, hi = h * dk, (h + 1) * dk
        s = jax.lax.dot_general(q[:, lo:hi], k[:, lo:hi], dn,
                                preferred_element_type=jnp.float32) * scale
        s = s + attn_bias
        s = s - jnp.max(s, axis=-1, keepdims=True)
        p = jnp.exp(s)
        p = p * _approx_recip(jnp.sum(p, axis=-1, keepdims=True))
        ctx_h = jnp.dot(p, v[:, lo:hi], preferred_element_type=jnp.float32)
        out = out + jnp.dot(ctx_h, wo[lo:hi, :],
                            preferred_element_type=jnp.float32)

    o_ref[...] = (res_ref[...].astype(jnp.float32) + out).astype(o_ref.dtype)


def _ln_ffn_kernel(x_ref, a_ref, b_ref, w1_ref, b1_ref, w2_ref, b2_ref, o_ref,
                   y_sc, acc_sc, *, eps):
    # out = x + relu(LN(x) @ w1 + b1) @ w2 + b2, with a grid over d_ff tiles.
    kf = pl.program_id(1)

    @pl.when(kf == 0)
    def _():
        x = x_ref[...].astype(jnp.float32)
        y_sc[...] = _ln_f32(x, a_ref[...], b_ref[...], eps)
        acc_sc[...] = jnp.zeros_like(acc_sc)

    h = jnp.dot(y_sc[...], w1_ref[...].astype(jnp.float32),
                preferred_element_type=jnp.float32) + b1_ref[...]
    h = jnp.maximum(h, 0.0)
    acc_sc[...] += jnp.dot(h, w2_ref[...].astype(jnp.float32),
                           preferred_element_type=jnp.float32)

    @pl.when(kf == pl.num_programs(1) - 1)
    def _():
        o_ref[...] = (x_ref[...].astype(jnp.float32) + acc_sc[...] + b2_ref[...]
                      ).astype(o_ref.dtype)


def _layernorm_kernel(x_ref, a_ref, b_ref, o_ref, *, eps):
    x = x_ref[...].astype(jnp.float32)
    o_ref[...] = _ln_f32(x, a_ref[...], b_ref[...], eps).astype(o_ref.dtype)


# -----------------------------------------------------------------------------
# pallas_call wrappers
# -----------------------------------------------------------------------------
def fused_ln_linear(x2d, w, bias, ln_a=None, ln_b=None, eps=1e-6):
    m, k = x2d.shape
    n = w.shape[1]
    tm = _pick_row_tile(m)
    tn = _pick_lane_tile(n)
    apply_ln = ln_a is not None

    in_specs = [pl.BlockSpec((tm, k), lambda i, j: (i, 0))]
    args = [x2d]
    if apply_ln:
        in_specs += [pl.BlockSpec((1, k), lambda i, j: (0, 0)),
                     pl.BlockSpec((1, k), lambda i, j: (0, 0))]
        args += [ln_a, ln_b]
    in_specs += [pl.BlockSpec((k, tn), lambda i, j: (0, j)),
                 pl.BlockSpec((1, tn), lambda i, j: (0, j))]
    args += [w, bias]

    return pl.pallas_call(
        functools.partial(_ln_linear_kernel, eps=eps, apply_ln=apply_ln),
        out_shape=jax.ShapeDtypeStruct((m, n), x2d.dtype),
        grid=(m // tm, n // tn),
        in_specs=in_specs,
        out_specs=pl.BlockSpec((tm, tn), lambda i, j: (i, j)),
        compiler_params=pltpu.CompilerParams(
            dimension_semantics=("parallel", "parallel")),
    )(*args)


def fused_attention(q_or_qkv, kv, attn_bias, wo, bo, residual, n_heads,
                    self_attn):
    B, Sq, _ = q_or_qkv.shape
    D = residual.shape[-1]
    dk = D // n_heads
    scale = 1.0 / math.sqrt(dk)

    if self_attn:
        Sk = Sq
        args = [q_or_qkv]
        in_specs = [pl.BlockSpec((None, Sq, 3 * D), lambda b: (b, 0, 0))]
    else:
        Sk = kv.shape[1]
        args = [q_or_qkv, kv]
        in_specs = [pl.BlockSpec((None, Sq, D), lambda b: (b, 0, 0)),
                    pl.BlockSpec((None, Sk, 2 * D), lambda b: (b, 0, 0))]

    mq = attn_bias.shape[1]            # Sq for tgt mask, 1 for key-padding mask
    in_specs += [
        pl.BlockSpec((None, mq, Sk), lambda b: (b, 0, 0)),
        pl.BlockSpec((D, D), lambda b: (0, 0)),
        pl.BlockSpec((1, D), lambda b: (0, 0)),
        pl.BlockSpec((None, Sq, D), lambda b: (b, 0, 0)),
    ]
    args += [attn_bias, wo, bo, residual]

    return pl.pallas_call(
        functools.partial(_attn_kernel, n_heads=n_heads, scale=scale,
                          self_attn=self_attn),
        out_shape=jax.ShapeDtypeStruct((B, Sq, D), residual.dtype),
        grid=(B,),
        in_specs=in_specs,
        out_specs=pl.BlockSpec((None, Sq, D), lambda b: (b, 0, 0)),
        compiler_params=pltpu.CompilerParams(
            dimension_semantics=("parallel",)),
    )(*args)


def fused_ln_ffn_residual(x2d, ln_a, ln_b, w1, b1, w2, b2, eps=1e-6):
    m, d = x2d.shape
    dff = w1.shape[1]
    tm = _pick_row_tile(m)
    tf = _pick_lane_tile(dff)

    return pl.pallas_call(
        functools.partial(_ln_ffn_kernel, eps=eps),
        out_shape=jax.ShapeDtypeStruct((m, d), x2d.dtype),
        grid=(m // tm, dff // tf),
        in_specs=[
            pl.BlockSpec((tm, d), lambda i, kf: (i, 0)),
            pl.BlockSpec((1, d), lambda i, kf: (0, 0)),
            pl.BlockSpec((1, d), lambda i, kf: (0, 0)),
            pl.BlockSpec((d, tf), lambda i, kf: (0, kf)),
            pl.BlockSpec((1, tf), lambda i, kf: (0, kf)),
            pl.BlockSpec((tf, d), lambda i, kf: (kf, 0)),
            pl.BlockSpec((1, d), lambda i, kf: (0, 0)),
        ],
        out_specs=pl.BlockSpec((tm, d), lambda i, kf: (i, 0)),
        scratch_shapes=[pltpu.VMEM((tm, d), jnp.float32),
                        pltpu.VMEM((tm, d), jnp.float32)],
        compiler_params=pltpu.CompilerParams(
            dimension_semantics=("parallel", "arbitrary")),
    )(x2d, ln_a, ln_b, w1, b1, w2, b2)


def layer_norm(x2d, a, b, eps=1e-6):
    m, d = x2d.shape
    tm = _pick_row_tile(m)
    return pl.pallas_call(
        functools.partial(_layernorm_kernel, eps=eps),
        out_shape=jax.ShapeDtypeStruct((m, d), x2d.dtype),
        grid=(m // tm,),
        in_specs=[pl.BlockSpec((tm, d), lambda i: (i, 0)),
                  pl.BlockSpec((1, d), lambda i: (0, 0)),
                  pl.BlockSpec((1, d), lambda i: (0, 0))],
        out_specs=pl.BlockSpec((tm, d), lambda i: (i, 0)),
        compiler_params=pltpu.CompilerParams(
            dimension_semantics=("parallel",)),
    )(x2d, a, b)


# -----------------------------------------------------------------------------
# Decoder forward
# -----------------------------------------------------------------------------
def decoder_forward(x, memory, src_mask, tgt_mask, params, n_heads):
    B, S, D = x.shape
    Sm = memory.shape[1]

    # Compact additive masks (computed once; 0 = visible, -1e9 = masked).
    tgt_bias = jnp.where(
        jnp.broadcast_to(tgt_mask, (B, 1, S, S))[:, 0] == 0,
        jnp.float32(-1e9), jnp.float32(0.0))                    # (B, S, S)
    src_bias = jnp.where(
        jnp.broadcast_to(src_mask, (B, 1, 1, Sm))[:, 0] == 0,
        jnp.float32(-1e9), jnp.float32(0.0))                    # (B, 1, Sm)

    mem2d = memory.reshape(B * Sm, D)

    for lp in params["layers"]:
        # sublayer 0: x + self_attn(LN(x))
        x2d = x.reshape(B * S, D)
        qkv = fused_ln_linear(x2d, lp["self_wqkv"], lp["self_bqkv"],
                              lp["ln0_a"], lp["ln0_b"]).reshape(B, S, 3 * D)
        x = fused_attention(qkv, None, tgt_bias, lp["self_wo"], lp["self_bo"],
                            x, n_heads, self_attn=True)

        # sublayer 1: x + src_attn(LN(x), memory, memory)
        x2d = x.reshape(B * S, D)
        q = fused_ln_linear(x2d, lp["src_wq"], lp["src_bq"],
                            lp["ln1_a"], lp["ln1_b"]).reshape(B, S, D)
        kv = fused_ln_linear(mem2d, lp["src_wkv"],
                             lp["src_bkv"]).reshape(B, Sm, 2 * D)
        x = fused_attention(q, kv, src_bias, lp["src_wo"], lp["src_bo"],
                            x, n_heads, self_attn=False)

        # sublayer 2: x + FFN(LN(x))
        x2d = x.reshape(B * S, D)
        x = fused_ln_ffn_residual(x2d, lp["ln2_a"], lp["ln2_b"],
                                  lp["w1"], lp["b1"], lp["w2"],
                                  lp["b2"]).reshape(B, S, D)

    # final LayerNorm
    return layer_norm(x.reshape(B * S, D),
                      params["norm_a"], params["norm_b"]).reshape(B, S, D)


# -----------------------------------------------------------------------------
# Deterministic parameter init + packing for the fused kernels
# -----------------------------------------------------------------------------
def init_params(key, d_model, d_ff, n_layers):
    def lin(k, din, dout):
        k1, k2 = jax.random.split(k)
        w = jax.random.normal(k1, (din, dout), jnp.float32) * 0.05
        b = jax.random.normal(k2, (dout,), jnp.float32) * 0.05
        return (w, b)

    def ln(_):
        return (jnp.ones((d_model,), jnp.float32),
                jnp.zeros((d_model,), jnp.float32))

    layers = []
    for _ in range(n_layers):
        key, *ks = jax.random.split(key, 11)
        layers.append(dict(
            self_attn=dict(wq=lin(ks[0], d_model, d_model),
                           wk=lin(ks[1], d_model, d_model),
                           wv=lin(ks[2], d_model, d_model),
                           wo=lin(ks[3], d_model, d_model)),
            src_attn=dict(wq=lin(ks[4], d_model, d_model),
                          wk=lin(ks[5], d_model, d_model),
                          wv=lin(ks[6], d_model, d_model),
                          wo=lin(ks[7], d_model, d_model)),
            ffn=dict(w1=lin(ks[8], d_model, d_ff),
                     w2=lin(ks[9], d_ff, d_model)),
            ln0=ln(None), ln1=ln(None), ln2=ln(None),
        ))
    return dict(layers=layers, norm=ln(None))


def pack_params(params):
    def row(b):
        return b.reshape(1, -1)

    packed_layers = []
    for lp in params["layers"]:
        sa, ca, ff = lp["self_attn"], lp["src_attn"], lp["ffn"]
        packed_layers.append(dict(
            self_wqkv=jnp.concatenate([sa["wq"][0], sa["wk"][0], sa["wv"][0]], 1),
            self_bqkv=row(jnp.concatenate([sa["wq"][1], sa["wk"][1], sa["wv"][1]])),
            self_wo=sa["wo"][0], self_bo=row(sa["wo"][1]),
            src_wq=ca["wq"][0], src_bq=row(ca["wq"][1]),
            src_wkv=jnp.concatenate([ca["wk"][0], ca["wv"][0]], 1),
            src_bkv=row(jnp.concatenate([ca["wk"][1], ca["wv"][1]])),
            src_wo=ca["wo"][0], src_bo=row(ca["wo"][1]),
            w1=ff["w1"][0], b1=row(ff["w1"][1]),
            w2=ff["w2"][0], b2=row(ff["w2"][1]),
            ln0_a=row(lp["ln0"][0]), ln0_b=row(lp["ln0"][1]),
            ln1_a=row(lp["ln1"][0]), ln1_b=row(lp["ln1"][1]),
            ln2_a=row(lp["ln2"][0]), ln2_b=row(lp["ln2"][1]),
        ))
    return dict(layers=packed_layers,
                norm_a=row(params["norm"][0]), norm_b=row(params["norm"][1]))


# -----------------------------------------------------------------------------
# Pure-JAX reference (for correctness check)
# -----------------------------------------------------------------------------
def _ref_ln(x, a, b, eps=1e-6):
    mean = jnp.mean(x, -1, keepdims=True)
    var = jnp.sum((x - mean) ** 2, -1, keepdims=True) / (x.shape[-1] - 1)
    return a * (x - mean) / (jnp.sqrt(var) + eps) + b


def _ref_mha(q_in, k_in, v_in, mask, p, n_heads):
    B, Sq, D = q_in.shape
    dk = D // n_heads

    def proj(x, wb):
        w, b = wb
        return (x @ w + b).reshape(B, -1, n_heads, dk).transpose(0, 2, 1, 3)

    q, k, v = proj(q_in, p["wq"]), proj(k_in, p["wk"]), proj(v_in, p["wv"])
    scores = jnp.einsum("bhqd,bhkd->bhqk", q, k) / math.sqrt(dk)
    scores = jnp.where(mask == 0, -1e9, scores)
    pattn = jax.nn.softmax(scores, axis=-1)
    ctx = jnp.einsum("bhqk,bhkd->bhqd", pattn, v)
    ctx = ctx.transpose(0, 2, 1, 3).reshape(B, Sq, D)
    wo, bo = p["wo"]
    return ctx @ wo + bo


def _ref_decoder(x, memory, src_mask, tgt_mask, params, n_heads):
    for lp in params["layers"]:
        y = _ref_ln(x, *lp["ln0"])
        x = x + _ref_mha(y, y, y, tgt_mask, lp["self_attn"], n_heads)
        y = _ref_ln(x, *lp["ln1"])
        x = x + _ref_mha(y, memory, memory, src_mask, lp["src_attn"], n_heads)
        y = _ref_ln(x, *lp["ln2"])
        (w1, b1) = lp["ffn"]["w1"]
        (w2, b2) = lp["ffn"]["w2"]
        x = x + (jnp.maximum(y @ w1 + b1, 0.0) @ w2 + b2)
    return _ref_ln(x, *params["norm"])


# -----------------------------------------------------------------------------
if __name__ == "__main__":
    B, S_TGT, S_SRC = 2, 8, 8
    D_MODEL, N_HEADS, D_FF, N_LAYERS = 32, 4, 64, 2

    key = jax.random.PRNGKey(0)
    kx, km, kp = jax.random.split(key, 3)
    x = jax.random.normal(kx, (B, S_TGT, D_MODEL), jnp.float32)
    memory = jax.random.normal(km, (B, S_SRC, D_MODEL), jnp.float32)

    # tgt_mask: causal (subsequent) mask, (B, 1, S_tgt, S_tgt); 0 = masked.
    tgt_mask = jnp.tril(jnp.ones((S_TGT, S_TGT), jnp.int32))[None, None]
    tgt_mask = jnp.broadcast_to(tgt_mask, (B, 1, S_TGT, S_TGT))
    # src_mask: all-valid key-padding mask, (B, 1, 1, S_src).
    src_mask = jnp.ones((B, 1, 1, S_SRC), jnp.int32)

    params = init_params(kp, D_MODEL, D_FF, N_LAYERS)
    packed = pack_params(params)

    out = decoder_forward(x, memory, src_mask, tgt_mask, packed, N_HEADS)
    out = jax.block_until_ready(out)

    ref = _ref_decoder(x, memory, src_mask, tgt_mask, params, N_HEADS)
    assert out.shape == (B, S_TGT, D_MODEL)
    err = float(jnp.max(jnp.abs(out - ref)))
    # Tolerance covers the EUP approximate-reciprocal used in softmax/LayerNorm.
    assert jnp.allclose(out, ref, atol=5e-3, rtol=5e-3), err
    print("KERNEL_OK")
</pallas_src>

<mosaic_0001>
module attributes {stable_mosaic.version = 11 : i64} {
  func.func @_ln_linear_kernel(%arg0: i32, %arg1: i32, %arg2: memref<16x32xf32, #tpu.memory_space<vmem>>, %arg3: memref<1x32xf32, #tpu.memory_space<vmem>>, %arg4: memref<1x32xf32, #tpu.memory_space<vmem>>, %arg5: memref<32x96xf32, #tpu.memory_space<vmem>>, %arg6: memref<1x96xf32, #tpu.memory_space<vmem>>, %arg7: memref<16x96xf32, #tpu.memory_space<vmem>>) attributes {dimension_semantics = [#tpu.dimension_semantics<parallel>, #tpu.dimension_semantics<parallel>], iteration_bounds = array<i64: 1, 1>, scalar_prefetch = 0 : i64, scratch_operands = 0 : i64, tpu.core_type = #tpu.core_type<tc>, window_params = [{transform_indices = @transform_0, window_bounds = array<i64: 16, 32>}, {pipeline_mode = #tpu.pipeline_mode<synchronous>, transform_indices = @transform_1, window_bounds = array<i64: 1, 32>}, {pipeline_mode = #tpu.pipeline_mode<synchronous>, transform_indices = @transform_2, window_bounds = array<i64: 1, 32>}, {transform_indices = @transform_3, window_bounds = array<i64: 32, 96>}, {transform_indices = @transform_4, window_bounds = array<i64: 1, 96>}, {transform_indices = @transform_5, window_bounds = array<i64: 16, 96>}]} {
    %c0 = arith.constant 0 : index
    %c0_0 = arith.constant 0 : index
    %0 = vector.load %arg2[%c0, %c0_0] : memref<16x32xf32, #tpu.memory_space<vmem>>, vector<16x32xf32>
    %c0_1 = arith.constant 0 : index
    %c0_2 = arith.constant 0 : index
    %1 = vector.load %arg3[%c0_1, %c0_2] : memref<1x32xf32, #tpu.memory_space<vmem>>, vector<1x32xf32>
    %c0_3 = arith.constant 0 : index
    %c0_4 = arith.constant 0 : index
    %2 = vector.load %arg4[%c0_3, %c0_4] : memref<1x32xf32, #tpu.memory_space<vmem>>, vector<1x32xf32>
    %cst = arith.constant dense<0.000000e+00> : vector<16xf32>
    %3 = vector.multi_reduction <add>, %0, %cst [1] : vector<16x32xf32> to vector<16xf32>
    %4 = vector.shape_cast %3 : vector<16xf32> to vector<16x1xf32>
    %cst_5 = arith.constant 3.200000e+01 : f32
    %5 = vector.broadcast %cst_5 : f32 to vector<16x1xf32>
    %6 = arith.divf %4, %5 : vector<16x1xf32>
    %7 = vector.broadcast %6 : vector<16x1xf32> to vector<16x32xf32>
    %8 = arith.subf %0, %7 : vector<16x32xf32>
    %9 = arith.mulf %8, %8 : vector<16x32xf32>
    %cst_6 = arith.constant dense<0.000000e+00> : vector<16xf32>
    %10 = vector.multi_reduction <add>, %9, %cst_6 [1] : vector<16x32xf32> to vector<16xf32>
    %11 = vector.shape_cast %10 : vector<16xf32> to vector<16x1xf32>
    %cst_7 = arith.constant 0.0322580636 : f32
    %12 = vector.broadcast %cst_7 : f32 to vector<16x1xf32>
    %13 = arith.mulf %11, %12 : vector<16x1xf32>
    %14 = math.sqrt %13 : vector<16x1xf32>
    %cst_8 = arith.constant 9.99999997E-7 : f32
    %15 = vector.broadcast %cst_8 : f32 to vector<16x1xf32>
    %16 = arith.addf %14, %15 : vector<16x1xf32>
    %17 = tpu.reciprocal %16 {approx = true} : vector<16x1xf32> -> vector<16x1xf32>
    %18 = vector.broadcast %1 : vector<1x32xf32> to vector<16x32xf32>
    %19 = arith.mulf %18, %8 : vector<16x32xf32>
    %20 = vector.broadcast %17 : vector<16x1xf32> to vector<16x32xf32>
    %21 = arith.mulf %19, %20 : vector<16x32xf32>
    %22 = vector.broadcast %2 : vector<1x32xf32> to vector<16x32xf32>
    %23 = arith.addf %21, %22 : vector<16x32xf32>
    %c0_9 = arith.constant 0 : index
    %c0_10 = arith.constant 0 : index
    %24 = vector.load %arg5[%c0_9, %c0_10] : memref<32x96xf32, #tpu.memory_space<vmem>>, vector<32x96xf32>
    %cst_11 = arith.constant dense<0.000000e+00> : vector<16x96xf32>
    %25 = tpu.matmul %23, %24, %cst_11 {dimension_numbers = #tpu.dot_dimension_numbers<[1], [0], [0], [1], [0, 0, 1, 1], [], []>} : vector<16x32xf32>, vector<32x96xf32>, vector<16x96xf32> -> vector<16x96xf32>
    %c0_12 = arith.constant 0 : index
    %c0_13 = arith.constant 0 : index
    %26 = vector.load %arg6[%c0_12, %c0_13] : memref<1x96xf32, #tpu.memory_space<vmem>>, vector<1x96xf32>
    %27 = vector.broadcast %26 : vector<1x96xf32> to vector<16x96xf32>
    %28 = arith.addf %25, %27 : vector<16x96xf32>
    %c0_14 = arith.constant 0 : index
    %c0_15 = arith.constant 0 : index
    %29 = vector.load %arg7[%c0_14, %c0_15] : memref<16x96xf32, #tpu.memory_space<vmem>>, vector<16x96xf32>
    tpu.vector_store %arg7[%c0_14, %c0_15], %28 {strides = array<i32>} : memref<16x96xf32, #tpu.memory_space<vmem>>, vector<16x96xf32>,
    return
  }
  func.func @transform_0(%arg0: i32, %arg1: i32) -> (i32, i32) {
    %c0_i32 = arith.constant 0 : i32
    %c0_i32_0 = arith.constant 0 : i32
    return %arg0, %c0_i32 : i32, i32
  }
  func.func @transform_1(%arg0: i32, %arg1: i32) -> (i32, i32) {
    %c0_i32 = arith.constant 0 : i32
    %c0_i32_0 = arith.constant 0 : i32
    %c0_i32_1 = arith.constant 0 : i32
    return %c0_i32, %c0_i32_0 : i32, i32
  }
  func.func @transform_2(%arg0: i32, %arg1: i32) -> (i32, i32) {
    %c0_i32 = arith.constant 0 : i32
    %c0_i32_0 = arith.constant 0 : i32
    %c0_i32_1 = arith.constant 0 : i32
    return %c0_i32, %c0_i32_0 : i32, i32
  }
  func.func @transform_3(%arg0: i32, %arg1: i32) -> (i32, i32) {
    %c0_i32 = arith.constant 0 : i32
    %c0_i32_0 = arith.constant 0 : i32
    return %c0_i32, %arg1 : i32, i32
  }
  func.func @transform_4(%arg0: i32, %arg1: i32) -> (i32, i32) {
    %c0_i32 = arith.constant 0 : i32
    %c0_i32_0 = arith.constant 0 : i32
    return %c0_i32, %arg1 : i32, i32
  }
  func.func @transform_5(%arg0: i32, %arg1: i32) -> (i32, i32) {
    %c0_i32 = arith.constant 0 : i32
    return %arg0, %arg1 : i32, i32
  }
}

</mosaic_0001>

<bundles_post_ra>
// kernel: tpu_custom_call.1
= control target key start
LH: loop header
LB: loop body
LE: loop exit
PB: predicated region body
PF: predicated region fallthrough
CT: control target
= control target key end

     0   :  { %10 = vsyncpa [#allocation3], 0  ;;  %s396_s0 = inlined_call_operand.hbm [shape: f32[16,32], index: 0, kind: input, shape index: {}]   ;;  %s397_s1 = inlined_call_operand.hbm [shape: f32[1,32], index: 1, kind: input, shape index: {}]   ;;  %s398_s2 = inlined_call_operand.vmem [shape: f32[1,32], index: 2, kind: input, shape index: {}]   ;;  %s399_s3 = inlined_call_operand.hbm [shape: f32[32,96], index: 3, kind: input, shape index: {}]   ;;  %s400_s4 = inlined_call_operand.vmem [shape: f32[1,96], index: 4, kind: input, shape index: {}]   ;;  %s401_s5 = inlined_call_operand.hbm [shape: f32[16,96], index: 5, kind: output, shape index: {}]  }
   0x1   :  { %11 = vsyncpa [#allocation6], 0  ;;  %s31_s20 = sshll.u32 %s397_s1, 4  ;;  %s32_s20 = int_to_ptr.hbm [resolvable:$true] %s31_s20 }
   0x2   :  { %12 = vsyncpa [#allocation4], 0  ;;  %s326_s21 = smov [#allocation5]   ;;  %s17_s25 = sshll.u32 %s396_s0, 4  ;;  %s18_s25 = int_to_ptr.hbm [resolvable:$true] %s17_s25 }
   0x3   :  { %s33_s22 = sshll.u32 %s326_s21, 4  ;;  %s327_s26 = smov [#allocation2]   ;;  %s34_s22 = int_to_ptr.vmem [resolvable:$true] %s33_s22 }
   0x4   :  { %36 = dma.hbm_to_vmem [thread:$0]  %s32_s20, 16, %s34_s22, [#allocation6]  }
   0x5   :  { %s19_s27 = sshll.u32 %s327_s26, 4  ;;  %s328_s28 = smov 128   ;;  %s20_s27 = int_to_ptr.vmem [resolvable:$true] %s19_s27 }
   0x6   :  { %s329_s29 = smov 8   ;;  %s43_s6 = sshll.u32 %s399_s3, 4  ;;  %s44_s6 = int_to_ptr.hbm [resolvable:$true] %s43_s6 }
   0x7   :  { %25 = dma.hbm_to_vmem [thread:$0]  %s18_s25, 256, %s20_s27, [#allocation3], %s328_s28, %s328_s28, %s329_s29  }
   0x8   :  { %s330_s7 = smov [#allocation7]  }
   0x9   :  { %s45_s8 = sshll.u32 %s330_s7, 4  ;;  %s46_s8 = int_to_ptr.vmem [resolvable:$true] %s45_s8 }
   0xa   :  { %51 = dma.hbm_to_vmem [thread:$0]  %s44_s6, 512, %s46_s8, [#allocation6], %s328_s28, %s328_s28, %s329_s29  }
   0xb   :  { %320 = dma.done.wait [#allocation3], 256  }
   0xc   :  { %321 = vsyncadd [#allocation3], 4294967040 }
   0xd   :  { %322 = dma.done.wait [#allocation6], 528  }
   0xe   :  { %323 = vsyncadd [#allocation6], 4294966768  ;;  %vm70_vm0 = vcmask 261120   ;;  %v66_v0 = vld [vmem:[#allocation2] sm:$0xff]  ;;  %v67_v2 = vld [vmem:[#allocation2 + $0x8] sm:$0xff]  ;;  %v331_v4 = vmov 32.0  }
   0xf   :  { %v71_v1 = vsel %vm70_vm0, %v66_v0, 0.0  ;;  %v74_v3 = vsel %vm70_vm0, %v67_v2, 0.0  ;;  %214 = vrcp.f32 %v331_v4  ;;  %v141_v21 = vld [vmem:[#allocation7 + $0x18] sm:$0xff]  ;;  %v140_v22 = vld [vmem:[#allocation7 + $0x10] sm:$0xff]  ;;  %v139_v23 = vld [vmem:[#allocation7 + $0x8] sm:$0xff]  ;;  %vm175_vm6 = vcmask 785408  }
  0x10   :  { %72 = vadd.xlane.f32.xlu0 %v71_v1  ;;  %164 = vmatpush.msra.mxu0 %v141_v21  ;;  %v138_v24 = vld [vmem:[#allocation7] sm:$0xff]  ;;  %v211_v46 = vld [vmem:[#allocation5] ss:$0 sm:$0xff]  ;;  %v212_v51 = vld [vmem:[%s398_s2] ss:$0 sm:$0xff]  ;;  %s332_s2 = smov [#allocation8]  }
  0x11   :  { %200 = vmatpush.msra.mxu1 %v141_v21  ;;  %v213_v61 = vld [vmem:[%s400_s4] ss:$0 sm:$0xff]  ;;  %s182_s11 = sshll.u32 %s332_s2, 4  ;;  %s184_s14 = sshll.u32 %s401_s5, 4  ;;  %s183_s11 = int_to_ptr.vmem [resolvable:$true] %s182_s11  ;;  %s185_s14 = int_to_ptr.hbm [resolvable:$true] %s184_s14 }
  0x12   :  { %165 = vmatpush.msra.mxu0 %v140_v22 }
  0x13   :  { %201 = vmatpush.msra.mxu1 %v140_v22 }
  0x14   :  { %166 = vmatpush.msra.mxu0 %v139_v23 }
  0x15   :  { %v215_v5 = vpop.eup %214  ;;  %202 = vmatpush.msra.mxu1 %v139_v23 }
  0x16   :  { %v78_v6 = vmul.f32 32.0, %v215_v5  ;;  %vm82_vm1 = vweird.f32 %v215_v5  ;;  %167 = vmatpush.msra.mxu0 %v138_v24 }
  0x17   :  { %203 = vmatpush.msra.mxu1 %v138_v24 }
  0x18   :  { %75 = vadd.xlane.f32.xlu0 %v74_v3  ;;  %v79_v7 = vsub.f32 1.0, %v78_v6 }
  0x1a   :  { %v80_v8 = vmul.f32 %v215_v5, %v79_v7 }
  0x1c   :  { %v81_v9 = vadd.f32 %v215_v5, %v80_v8 }
  0x1e   :  { %v83_v10 = vsel %vm82_vm1, %v215_v5, %v81_v9 }
  0x83   :  { %v73_v11 = vpop.xlane.xlu0 %72 }
  0x84   :  { %v84_v12 = vmul.f32 %v83_v10, %v73_v11 }
  0x86   :  { %v86_v13 = vsub.f32 %v66_v0, %v84_v12 }
  0x88   :  { %v88_v14 = vmul.f32 %v86_v13, %v86_v13  ;;  %v129_v50 = vmul.f32 %v211_v46, %v86_v13 }
  0x8a   :  { %v90_v15 = vsel %vm70_vm0, %v88_v14, 0.0 }
  0x8b   :  { %91 = vadd.xlane.f32.xlu1 %v90_v15  ;;  %v76_v16 = vpop.xlane.xlu0 %75 }
  0x8c   :  { %v85_v17 = vmul.f32 %v83_v10, %v76_v16 }
  0x8e   :  { %v87_v18 = vsub.f32 %v67_v2, %v85_v17 }
  0x90   :  { %v89_v19 = vmul.f32 %v87_v18, %v87_v18  ;;  %v130_v57 = vmul.f32 %v211_v46, %v87_v18 }
  0x92   :  { %v93_v20 = vsel %vm70_vm0, %v89_v19, 0.0 }
  0x93   :  { %94 = vadd.xlane.f32.xlu1 %v93_v20 }
  0xfe   :  { %v92_v25 = vpop.xlane.xlu1 %91 }
  0xff   :  { %v96_v26 = vmul.f32 0.032258064, %v92_v25 }
 0x101   :  { %216 = vrsqrt.f32 %v96_v26  ;;  %vm105_vm2 = vcmp.eq.f32.partialorder %v96_v26, inf  ;;  %v108_v39 = vand.u32 2147483648, %v96_v26  ;;  %vm107_vm3 = vcmp.eq.f32.partialorder %v96_v26, 0.0 }
 0x106   :  { %v95_v27 = vpop.xlane.xlu1 %94 }
 0x107   :  { %v217_v28 = vpop.eup %216  ;;  %v97_v29 = vmul.f32 0.032258064, %v95_v27 }
 0x108   :  { %v99_v30 = vmul.f32 %v217_v28, %v96_v26 }
 0x109   :  { %218 = vrsqrt.f32 %v97_v29  ;;  %vm117_vm4 = vcmp.eq.f32.partialorder %v97_v29, inf  ;;  %v120_v48 = vand.u32 2147483648, %v97_v29  ;;  %vm119_vm5 = vcmp.eq.f32.partialorder %v97_v29, 0.0 }
 0x10a   :  { %v100_v31 = vmul.f32 %v217_v28, %v99_v30 }
 0x10c   :  { %v101_v32 = vmul.f32 0.5, %v100_v31 }
 0x10e   :  { %v102_v33 = vsub.f32 1.5, %v101_v32 }
 0x10f   :  { %v219_v34 = vpop.eup %218 }
 0x110   :  { %v111_v35 = vmul.f32 %v219_v34, %v97_v29  ;;  %v103_v36 = vmul.f32 %v217_v28, %v102_v33 }
 0x112   :  { %v104_v37 = vmul.f32 %v103_v36, %v96_v26  ;;  %v112_v38 = vmul.f32 %v219_v34, %v111_v35 }
 0x114   :  { %v106_v40 = vsel %vm105_vm2, %v96_v26, %v104_v37  ;;  %v113_v41 = vmul.f32 0.5, %v112_v38 }
 0x115   :  { %v109_v42 = vsel %vm107_vm3, %v108_v39, %v106_v40 }
 0x116   :  { %v122_v43 = vadd.f32 1e-06, %v109_v42  ;;  %v114_v44 = vsub.f32 1.5, %v113_v41 }
 0x118   :  { %220 = vrcp.f32 %v122_v43  ;;  %v115_v45 = vmul.f32 %v219_v34, %v114_v44 }
 0x11a   :  { %v116_v47 = vmul.f32 %v115_v45, %v97_v29 }
 0x11c   :  { %v118_v49 = vsel %vm117_vm4, %v97_v29, %v116_v47 }
 0x11d   :  { %v121_v52 = vsel %vm119_vm5, %v120_v48, %v118_v49 }
 0x11e   :  { %v221_v53 = vpop.eup %220  ;;  %v123_v54 = vadd.f32 1e-06, %v121_v52 }
 0x11f   :  { %v131_v55 = vmul.f32 %v221_v53, %v129_v50 }
 0x120   :  { %222 = vrcp.f32 %v123_v54 }
 0x121   :  { %v136_v56 = vadd.f32 %v212_v51, %v131_v55 }
 0x123   :  { %198 = vmatmul.msk.f32.vlgmr.msra.gmra.mxu0 %vm70_vm0, %v136_v56 }
 0x126   :  { %v223_v58 = vpop.eup %222 }
 0x127   :  { %v132_v59 = vmul.f32 %v223_v58, %v130_v57 }
 0x129   :  { %v137_v60 = vadd.f32 %v212_v51, %v132_v59 }
 0x12b   :  { %199 = vmatmul.msk.f32.vlgmr.msra.gmra.mxu1 %vm70_vm0, %v137_v60 }
 0x1a0   :  { %v169_v62 = vpop.f32.mrf.mxu0 }
 0x1a1   :  { %v170_v63 = vadd.f32 %v213_v61, %v169_v62 }
 0x1a3   :  { %176 = vst.msk [vmem:[#allocation8] sm:$0xff] %vm175_vm6, %v170_v63 }
 0x1a8   :  { %v172_v0 = vpop.f32.mrf.mxu1 }
 0x1a9   :  { %v173_v1 = vadd.f32 %v213_v61, %v172_v0 }
 0x1ab   :  { %177 = vst.msk [vmem:[#allocation8 + $0x8] sm:$0xff] %vm175_vm6, %v173_v1 }
 0x1ac   :  { %190 = dma.vmem_to_hbm [thread:$0]  %s183_s11, 256, %s185_s14, [#allocation4], %s328_s28, %s328_s28, %s329_s29  }
 0x1ad   :  { %324 = dma.done.wait [#allocation4], 256  }
 0x1ae   :  { %325 = vsyncadd [#allocation4], 4294967040 }
 0x1af   :  { %195 = vsyncpa [#allocation3], 1 }
 0x1b0   :  { %196 = vsyncpa [#allocation6], 1 }
 0x1b1   :  { %197 = vsyncpa [#allocation4], 1 }

</bundles_post_ra>
